<compile_context>
chip_gen: v7x
topology: tpu7x:2x2x1
jax: 0.10.0
libtpu: 0.0.40
codegen_flags: <defaults>
</compile_context>

<pallas_src>
import jax
import jax.numpy as jnp
import numpy as np
from jax.experimental import pallas as pl
from jax.experimental.pallas import tpu as pltpu


def _lam_kernel(x_ref, gamma_ref, o_ref):
    # x_ref / o_ref: (Bt, L, D) VMEM tile (Bt batch slices per grid step).
    # gamma_ref: (1,) float32 scalar parameter in SMEM.
    gamma = gamma_ref[0]
    bt = x_ref.shape[0]
    for i in range(bt):          # static (trace-time) unroll over batch slices
        xi = x_ref[i]                                            # (L, D), native dtype
        # energy = X^T X  (D, D).  Native-dtype operands, f32 MXU accumulation.
        # Exactly symmetric (same contraction order for [d,e] and [e,d]).
        energy = jax.lax.dot_general(
            xi, xi, dimension_numbers=(((0,), (0,)), ((), ())),
            preferred_element_type=jnp.float32)                  # (D, D)
        # Softmax over the attention row axis, built TRANSPOSED: because energy
        # is symmetric, reducing over the sublane axis (axis 0) yields the row
        # max / row sum as lane-aligned (1, D) vectors, so every broadcast below
        # (against the (D, D) p^T and the (L, D) output) needs no relayout.
        m = jnp.max(energy, axis=0, keepdims=True)               # (1, D)
        p_t = jnp.exp(energy - m)                                # p_t[e, d] = p[d, e]
        s_t = jnp.sum(p_t, axis=0, keepdims=True)                # (1, D) row sums of p
        # Unnormalized attention @ V in the original layout: canonical matmul
        #   out_un[l, d] = sum_e X[l, e] * p[d, e]  ==  X @ p^T   (no transposed RHS)
        out_un = jax.lax.dot_general(
            xi, p_t.astype(xi.dtype),                            # bf16 stays bf16
            dimension_numbers=(((1,), (0,)), ((), ())),
            preferred_element_type=jnp.float32)                  # (L, D)
        # Fused epilogue: deferred softmax normalization (EUP approx reciprocal,
        # lane-aligned broadcast) + gamma scale + residual in one f32 pass.
        inv_s = pl.reciprocal(s_t, approx=True)                  # (1, D)
        o_ref[i] = (gamma * (out_un * inv_s)
                    + xi.astype(jnp.float32)).astype(o_ref.dtype)


def _per_batch_vmem_bytes(L, D, itemsize):
    # Conservative per-batch-slice, per-grid-step footprint:
    #   double-buffered input + output tiles (native dtype)
    #   + f32 intermediates: energy & p^T (D x D), out_un & f32 residual (L x D).
    return 4 * L * D * itemsize + 2 * D * D * 4 + 2 * L * D * 4


def _choose_batch_tile(B, L, D, itemsize, budget_bytes=40 << 20):
    """Largest batch tile whose per-step VMEM footprint fits `budget_bytes`
    (<= ~48 MiB keeps headroom on v7x's 64 MiB VMEM), preferring a divisor of B
    and capping the in-kernel unroll length."""
    per_b = _per_batch_vmem_bytes(L, D, itemsize)
    bt = max(1, min(B, budget_bytes // max(per_b, 1), 16))
    while B % bt:
        bt -= 1
    return max(bt, 1)


def lam_module_forward(x, gamma):
    """LAM_Module.forward.  x: (B, head, num, dim); gamma: scalar parameter."""
    B, H, N, D = x.shape
    L = H * N
    xf = x.reshape(B, L, D)            # merge (head, num); dim stays the lane axis
    gamma_arr = jnp.asarray(gamma, dtype=jnp.float32).reshape(1)

    itemsize = np.dtype(x.dtype).itemsize
    bt = _choose_batch_tile(B, L, D, itemsize)
    footprint = bt * _per_batch_vmem_bytes(L, D, itemsize)
    # Explicit scoped-VMEM request (defaults: 16 MiB v5e / 32 MiB v6e+v7x) so the
    # pipeline keeps full double-buffering; capped at v7x's 64 MiB physical VMEM.
    vmem_limit = int(min(max(2 * footprint, 16 << 20), 64 << 20))

    cost = pl.CostEstimate(
        flops=4 * B * L * D * D,                 # two 2*L*D*D matmuls per batch
        transcendentals=B * (D * D + D),         # exp(D*D) + reciprocal(D)
        bytes_accessed=2 * B * L * D * itemsize + 4)

    # TODO(synk): for very large L*D (a single batch slice > ~40 MiB) tile the L
    # (contraction) axis with a reduction grid axis: accumulate energy over
    # L-tiles, finalize the D x D softmax, then a second pass for X @ p^T.
    # TODO(synk): with D < 128 the output store is lane-masked and the MXU
    # columns are underfilled; production shapes should keep dim a multiple of
    # 128 (256-aligned for the v6e/v7x 2x256^2 MXU).
    # TODO(synk): if B // bt < 2 on v7x, add a second "parallel" grid axis over
    # L-row tiles of the second matmul so both TensorCores get work.
    out = pl.pallas_call(
        _lam_kernel,
        out_shape=jax.ShapeDtypeStruct((B, L, D), x.dtype),
        grid=(B // bt,),
        in_specs=[
            pl.BlockSpec((bt, L, D), lambda g: (g, 0, 0)),        # batch tile / step
            pl.BlockSpec(memory_space=pltpu.MemorySpace.SMEM),    # gamma scalar
        ],
        out_specs=pl.BlockSpec((bt, L, D), lambda g: (g, 0, 0)),
        compiler_params=pltpu.CompilerParams(
            dimension_semantics=("parallel",),   # batch-chunk axis -> both TCs on v7x
            vmem_limit_bytes=vmem_limit),
        cost_estimate=cost,
    )(xf, gamma_arr)
    return out.reshape(B, H, N, D)


def _reference_np(x, gamma):
    """Pure NumPy (float64) mirror of the PyTorch forward, for verification."""
    xn = np.asarray(x, dtype=np.float64)
    B, H, N, D = xn.shape
    xf = xn.reshape(B, H * N, D)
    energy = np.einsum("bld,ble->bde", xf, xf)
    e = np.exp(energy - energy.max(axis=-1, keepdims=True))
    att = e / e.sum(axis=-1, keepdims=True)
    out = np.einsum("bde,ble->bld", att, xf)
    return (gamma * out + xf).reshape(B, H, N, D)


if __name__ == "__main__":
    key = jax.random.PRNGKey(0)
    B, H, N, D = 2, 4, 8, 32            # (batchsize, head, num, dim)
    # Scale inputs so the softmax logits are moderate (non-degenerate attention).
    x = 0.3 * jax.random.normal(key, (B, H, N, D), dtype=jnp.float32)
    gamma = 0.75                         # nonzero to exercise the attention path

    out = jax.block_until_ready(lam_module_forward(x, gamma))
    assert out.shape == x.shape and out.dtype == x.dtype

    ref = _reference_np(x, gamma)
    assert np.allclose(np.asarray(out, dtype=np.float64), ref, atol=2e-2, rtol=2e-2)

    # gamma == 0 (the module's initialization) must return x unchanged.
    out0 = jax.block_until_ready(lam_module_forward(x, 0.0))
    assert np.allclose(np.asarray(out0), np.asarray(x), atol=1e-6)

    # bf16 path: the MXU consumes the native dtype directly (no f32 upcast).
    xb = x.astype(jnp.bfloat16)
    outb = jax.block_until_ready(lam_module_forward(xb, gamma))
    assert outb.shape == x.shape and outb.dtype == jnp.bfloat16
    refb = _reference_np(np.asarray(xb.astype(jnp.float32)), gamma)
    assert np.allclose(np.asarray(outb.astype(jnp.float32), dtype=np.float64),
                       refb, atol=6e-2, rtol=6e-2)

    print("KERNEL_OK")
</pallas_src>

<mosaic_0001>
module attributes {stable_mosaic.version = 11 : i64} {
  func.func @_lam_kernel(%arg0: i32, %arg1: memref<2x32x32xf32, #tpu.memory_space<vmem>>, %arg2: memref<1xf32, #tpu.memory_space<smem>>, %arg3: memref<2x32x32xf32, #tpu.memory_space<vmem>>) attributes {dimension_semantics = [#tpu.dimension_semantics<parallel>], iteration_bounds = array<i64: 1>, scalar_prefetch = 0 : i64, scratch_operands = 0 : i64, tpu.core_type = #tpu.core_type<tc>, window_params = [{transform_indices = @transform_0, window_bounds = array<i64: 2, 32, 32>}, {transform_indices = @transform_1, window_bounds = array<i64: 1>}, {transform_indices = @transform_2, window_bounds = array<i64: 2, 32, 32>}]} {
    %c0 = arith.constant 0 : index
    %0 = memref.load %arg2[%c0] : memref<1xf32, #tpu.memory_space<smem>>
    %c0_0 = arith.constant 0 : index
    %c0_1 = arith.constant 0 : index
    %c0_2 = arith.constant 0 : index
    %1 = vector.load %arg1[%c0_0, %c0_1, %c0_2] : memref<2x32x32xf32, #tpu.memory_space<vmem>>, vector<1x32x32xf32>
    %2 = vector.shape_cast %1 : vector<1x32x32xf32> to vector<32x32xf32>
    %cst = arith.constant dense<0.000000e+00> : vector<32x32xf32>
    %3 = tpu.matmul %2, %2, %cst {dimension_numbers = #tpu.dot_dimension_numbers<[0], [0], [1], [1], [0, 1, 1, 1], [], []>} : vector<32x32xf32>, vector<32x32xf32>, vector<32x32xf32> -> vector<32x32xf32>
    %cst_3 = arith.constant dense<0xFF800000> : vector<32xf32>
    %4 = vector.multi_reduction <maximumf>, %3, %cst_3 [0] : vector<32x32xf32> to vector<32xf32>
    %5 = vector.shape_cast %4 : vector<32xf32> to vector<1x32xf32>
    %6 = vector.broadcast %5 : vector<1x32xf32> to vector<32x32xf32>
    %7 = arith.subf %3, %6 : vector<32x32xf32>
    %8 = math.exp %7 : vector<32x32xf32>
    %cst_4 = arith.constant dense<0.000000e+00> : vector<32xf32>
    %9 = vector.multi_reduction <add>, %8, %cst_4 [0] : vector<32x32xf32> to vector<32xf32>
    %10 = vector.shape_cast %9 : vector<32xf32> to vector<1x32xf32>
    %cst_5 = arith.constant dense<0.000000e+00> : vector<32x32xf32>
    %11 = tpu.matmul %2, %8, %cst_5 {dimension_numbers = #tpu.dot_dimension_numbers<[1], [0], [0], [1], [0, 0, 1, 1], [], []>} : vector<32x32xf32>, vector<32x32xf32>, vector<32x32xf32> -> vector<32x32xf32>
    %12 = tpu.reciprocal %10 {approx = true} : vector<1x32xf32> -> vector<1x32xf32>
    %13 = vector.broadcast %12 : vector<1x32xf32> to vector<32x32xf32>
    %14 = arith.mulf %11, %13 : vector<32x32xf32>
    %15 = vector.broadcast %0 : f32 to vector<32x32xf32>
    %16 = arith.mulf %15, %14 : vector<32x32xf32>
    %17 = arith.addf %16, %2 : vector<32x32xf32>
    %c0_6 = arith.constant 0 : index
    %c0_7 = arith.constant 0 : index
    %c0_8 = arith.constant 0 : index
    %18 = vector.load %arg3[%c0_6, %c0_7, %c0_8] : memref<2x32x32xf32, #tpu.memory_space<vmem>>, vector<1x32x32xf32>
    %19 = vector.shape_cast %18 : vector<1x32x32xf32> to vector<32x32xf32>
    %20 = vector.shape_cast %17 : vector<32x32xf32> to vector<1x32x32xf32>
    tpu.vector_store %arg3[%c0_6, %c0_7, %c0_8], %20 {strides = array<i32>} : memref<2x32x32xf32, #tpu.memory_space<vmem>>, vector<1x32x32xf32>,
    %c1 = arith.constant 1 : index
    %c0_9 = arith.constant 0 : index
    %c0_10 = arith.constant 0 : index
    %21 = vector.load %arg1[%c1, %c0_9, %c0_10] : memref<2x32x32xf32, #tpu.memory_space<vmem>>, vector<1x32x32xf32>
    %22 = vector.shape_cast %21 : vector<1x32x32xf32> to vector<32x32xf32>
    %cst_11 = arith.constant dense<0.000000e+00> : vector<32x32xf32>
    %23 = tpu.matmul %22, %22, %cst_11 {dimension_numbers = #tpu.dot_dimension_numbers<[0], [0], [1], [1], [0, 1, 1, 1], [], []>} : vector<32x32xf32>, vector<32x32xf32>, vector<32x32xf32> -> vector<32x32xf32>
    %cst_12 = arith.constant dense<0xFF800000> : vector<32xf32>
    %24 = vector.multi_reduction <maximumf>, %23, %cst_12 [0] : vector<32x32xf32> to vector<32xf32>
    %25 = vector.shape_cast %24 : vector<32xf32> to vector<1x32xf32>
    %26 = vector.broadcast %25 : vector<1x32xf32> to vector<32x32xf32>
    %27 = arith.subf %23, %26 : vector<32x32xf32>
    %28 = math.exp %27 : vector<32x32xf32>
    %cst_13 = arith.constant dense<0.000000e+00> : vector<32xf32>
    %29 = vector.multi_reduction <add>, %28, %cst_13 [0] : vector<32x32xf32> to vector<32xf32>
    %30 = vector.shape_cast %29 : vector<32xf32> to vector<1x32xf32>
    %cst_14 = arith.constant dense<0.000000e+00> : vector<32x32xf32>
    %31 = tpu.matmul %22, %28, %cst_14 {dimension_numbers = #tpu.dot_dimension_numbers<[1], [0], [0], [1], [0, 0, 1, 1], [], []>} : vector<32x32xf32>, vector<32x32xf32>, vector<32x32xf32> -> vector<32x32xf32>
    %32 = tpu.reciprocal %30 {approx = true} : vector<1x32xf32> -> vector<1x32xf32>
    %33 = vector.broadcast %32 : vector<1x32xf32> to vector<32x32xf32>
    %34 = arith.mulf %31, %33 : vector<32x32xf32>
    %35 = vector.broadcast %0 : f32 to vector<32x32xf32>
    %36 = arith.mulf %35, %34 : vector<32x32xf32>
    %37 = arith.addf %36, %22 : vector<32x32xf32>
    %c1_15 = arith.constant 1 : index
    %c0_16 = arith.constant 0 : index
    %c0_17 = arith.constant 0 : index
    %38 = vector.load %arg3[%c1_15, %c0_16, %c0_17] : memref<2x32x32xf32, #tpu.memory_space<vmem>>, vector<1x32x32xf32>
    %39 = vector.shape_cast %38 : vector<1x32x32xf32> to vector<32x32xf32>
    %40 = vector.shape_cast %37 : vector<32x32xf32> to vector<1x32x32xf32>
    tpu.vector_store %arg3[%c1_15, %c0_16, %c0_17], %40 {strides = array<i32>} : memref<2x32x32xf32, #tpu.memory_space<vmem>>, vector<1x32x32xf32>,
    return
  }
  func.func @transform_0(%arg0: i32) -> (i32, i32, i32) {
    %c0_i32 = arith.constant 0 : i32
    %c0_i32_0 = arith.constant 0 : i32
    %c0_i32_1 = arith.constant 0 : i32
    return %arg0, %c0_i32, %c0_i32_0 : i32, i32, i32
  }
  func.func @transform_1(%arg0: i32) -> i32 {
    %c0_i32 = arith.constant 0 : i32
    %c0_i32_0 = arith.constant 0 : i32
    return %c0_i32 : i32
  }
  func.func @transform_2(%arg0: i32) -> (i32, i32, i32) {
    %c0_i32 = arith.constant 0 : i32
    %c0_i32_0 = arith.constant 0 : i32
    %c0_i32_1 = arith.constant 0 : i32
    return %arg0, %c0_i32, %c0_i32_0 : i32, i32, i32
  }
}

</mosaic_0001>

<bundles_post_ra>
// kernel: tpu_custom_call.1
= control target key start
LH: loop header
LB: loop body
LE: loop exit
PB: predicated region body
PF: predicated region fallthrough
CT: control target
= control target key end

     0   :  { %8 = vsyncpa [#allocation4], 0  ;;  %s968_s0 = inlined_call_operand.hbm [shape: f32[2,32,32], index: 0, kind: input, shape index: {}]   ;;  %s969_s1 = inlined_call_operand.<no memory space> [shape: f32[1], index: 1, kind: input, shape index: {}]   ;;  %s970_s2 = inlined_call_operand.hbm [shape: f32[2,32,32], index: 2, kind: output, shape index: {}]  }
   0x1   :  { %9 = vsyncpa [#allocation5], 0  ;;  %s828_s9 = smov [#allocation3]   ;;  %s780_s13 = scalar_lea.hbm %s968_s0, 1024 }
   0x2   :  { %s15_s10 = sshll.u32 %s828_s9, 4  ;;  %p781_p0 = scmp.ne.s32.totalorder %s968_s0, %s780_s13  ;;  %s16_s10 = int_to_ptr.vmem [resolvable:$true] %s15_s10 }
   0x3   :  { %p784_p1 = scmp.lt.u32.totalorder %s780_s13, %s968_s0 }
   0x5   :  { %p786_p2 = pnand %p784_p1, %p781_p0 }
   0x7   :  { %789 = shalt.err (!%p786_p2)
}
   0x8   :  { %s790_s18 = scalar_lea.vmem %s16_s10, 1024  ;;  %p795_p4 = scmp.lt.s32.totalorder %s16_s10, %s16_s10 }
   0x9   :  { %p791_p3 = scmp.ne.s32.totalorder %s16_s10, %s790_s18  ;;  %p796_p5 = scmp.lt.s32.totalorder %s790_s18, %s790_s18 }
   0xb   :  { %p797_p6 = por %p796_p5, %p795_p4 }
   0xd   :  { %p798_p7 = pnand %p797_p6, %p791_p3 }
   0xf   :  { %801 = shalt.err (!%p798_p7)
}
  0x10   :  { %s829_s19 = smov 128   ;;  %s830_s20 = smov 8  }
  0x11   :  { %21 = dma.hbm_to_vmem [thread:$0]  %s968_s0, 1024, %s16_s10, [#allocation4], %s829_s19, %s829_s19, %s830_s20  }
  0x12   :  { %824 = dma.done.wait [#allocation4], 1024  }
  0x13   :  { %825 = vsyncadd [#allocation4], 4294966272  ;;  %v862_v0 = vld [vmem:[#allocation3] sm:$0xff]  ;;  %v864_v1 = vld [vmem:[#allocation3 + $0x8] sm:$0xff]  ;;  %vm64_vm0 = vcmask 261120  }
  0x14   :  { %v866_v2 = vld [vmem:[#allocation3 + $0x20] sm:$0xff]  ;;  %32 = vxpose.xlu0.b32.start [1/4] (short) (narrow) %v862_v0, 32  ;;  %v870_v3 = vld [vmem:[#allocation3 + $0x10] sm:$0xff]  ;;  %v872_v4 = vld [vmem:[#allocation3 + $0x18] sm:$0xff]  ;;  %v723_v5 = vpack.c.bf16 %v864_v1, %v862_v0  ;;  %689 = vmatprep.mubr.msk.f32.mxu1 %vm64_vm0, %v862_v0 }
  0x15   :  { %320 = vxpose.xlu1.b32.start [1/4] (short) (narrow) %v866_v2, 32  ;;  %v876_v6 = vld [vmem:[#allocation3 + $0x28] sm:$0xff]  ;;  %v727_v7 = vpack.c.bf16 %v872_v4, %v870_v3  ;;  %v884_v8 = vld [vmem:[#allocation3 + $0x30] sm:$0xff]  ;;  %v890_v10 = vld [vmem:[#allocation3 + $0x38] sm:$0xff] }
  0x16   :  { %724 = vmatprep.subr.bf16.mxu0 %v723_v5  ;;  %v739_v9 = vpack.c.bf16 %v876_v6, %v866_v2  ;;  %v743_v13 = vpack.c.bf16 %v890_v10, %v884_v8 }
  0x17   :  { %726 = vmatpush3.bf16.msra.mxu0 %v723_v5 }
  0x18   :  { %33 = vxpose.xlu0.b32.cont [2/4] (short) (narrow) %v864_v1, 32  ;;  %728 = vmatprep.subr.bf16.mxu0 %v727_v7 }
  0x19   :  { %321 = vxpose.xlu1.b32.cont [2/4] (short) (narrow) %v876_v6, 32 }
  0x1b   :  { %730 = vmatpush3.bf16.msra.mxu0 %v727_v7 }
  0x1c   :  { %34 = vxpose.xlu0.b32.cont [3/4] (short) (narrow) %v870_v3, 32  ;;  %740 = vmatprep.subr.bf16.mxu0 %v739_v9 }
  0x1d   :  { %322 = vxpose.xlu1.b32.cont [3/4] (short) (narrow) %v884_v8, 32 }
  0x20   :  { %35 = vxpose.xlu0.b32.end [4/4] (short) (narrow) %v872_v4, 32 }
  0x21   :  { %323 = vxpose.xlu1.b32.end [4/4] (short) (narrow) %v890_v10, 32 }
  0x94   :  { %v48_v11 = vpop.trf.xlu0 }
  0x95   :  { %v336_v12 = vpop.trf.xlu1  ;;  %675 = vmatprep.mubr.msk.f32.mxu0 %vm64_vm0, %v48_v11 }
  0x98   :  { %v49_v14 = vpop.trf.xlu0 }
  0x99   :  { %676 = vmatmul.mubr.msk.f32.vlgmr.msra.gmra.mrb[0].mxu0 %vm64_vm0, %v49_v14  ;;  %v337_v15 = vpop.trf.xlu1 }
  0x9a   :  { %742 = vmatpush3.bf16.msra.mxu0 %v739_v9 }
  0x9b   :  { %744 = vmatprep.subr.bf16.mxu0 %v743_v13 }
  0x9c   :  { %v50_v16 = vpop.trf.xlu0 }
  0x9d   :  { %678 = vmatprep.mubr.msk.f32.mxu0 %vm64_vm0, %v50_v16  ;;  %v338_v18 = vpop.trf.xlu1 }
  0x9e   :  { %746 = vmatpush3.bf16.msra.mxu0 %v743_v13 }
  0xa0   :  { %v51_v17 = vpop.trf.xlu0 }
  0xa1   :  { %679 = vmatmul.mubr.msk.f32.gmra.mrb[2].mxu0 %vm64_vm0, %v51_v17  ;;  %v339_v19 = vpop.trf.xlu1 }
  0xa2   :  { %703 = vmatprep.mubr.msk.f32.mxu0 %vm64_vm0, %v336_v12 }
  0xa5   :  { %704 = vmatmul.mubr.msk.f32.vlgmr.msra.gmra.mrb[4].mxu0 %vm64_vm0, %v337_v15 }
  0xa6   :  { %706 = vmatprep.mubr.msk.f32.mxu0 %vm64_vm0, %v338_v18 }
  0xa9   :  { %707 = vmatmul.mubr.msk.f32.gmra.mrb[6].mxu0 %vm64_vm0, %v339_v19 }
 0x16c   :  { %v677_v20 = vpop.f32.mrb[0].mxu0 }
 0x16d   :  { %v163_v21 = vsel %vm64_vm0, %v677_v20, -inf  ;;  %v143_v22 = vpop.f32.mrb[1].mxu0 }
 0x16e   :  { %v162_v23 = vsel %vm64_vm0, %v143_v22, -inf }
 0x16f   :  { %v166_v24 = vmax.f32 %v162_v23, %v163_v21 }
 0x174   :  { %v680_v25 = vpop.f32.mrb[2].mxu0 }
 0x175   :  { %v165_v26 = vsel %vm64_vm0, %v680_v25, -inf  ;;  %v153_v27 = vpop.f32.mrb[3].mxu0 }
 0x176   :  { %v164_v28 = vsel %vm64_vm0, %v153_v27, -inf }
 0x177   :  { %v167_v29 = vmax.f32 %v164_v28, %v165_v26 }
 0x178   :  { %v705_v30 = vpop.f32.mrb[4].mxu0 }
 0x179   :  { %v168_v31 = vmax.f32 %v166_v24, %v167_v29  ;;  %v450_v32 = vsel %vm64_vm0, %v705_v30, -inf  ;;  %v430_v33 = vpop.f32.mrb[5].mxu0 }
 0x17a   :  { %v449_v34 = vsel %vm64_vm0, %v430_v33, -inf }
 0x17b   :  { %v169_v35 = vrot.slane %v168_v31, 4  ;;  %v453_v36 = vmax.f32 %v449_v34, %v450_v32 }
 0x17c   :  { %v708_v37 = vpop.f32.mrb[6].mxu0 }
 0x17d   :  { %v170_v38 = vmax.f32 %v168_v31, %v169_v35  ;;  %v452_v39 = vsel %vm64_vm0, %v708_v37, -inf  ;;  %v440_v40 = vpop.f32.mrb[7].mxu0 }
 0x17e   :  { %v451_v41 = vsel %vm64_vm0, %v440_v40, -inf }
 0x17f   :  { %v171_v42 = vrot.slane %v170_v38, 2  ;;  %v454_v43 = vmax.f32 %v451_v41, %v452_v39 }
 0x181   :  { %v172_v44 = vmax.f32 %v170_v38, %v171_v42  ;;  %v455_v45 = vmax.f32 %v453_v36, %v454_v43 }
 0x183   :  { %v173_v46 = vrot.slane %v172_v44, 1  ;;  %v456_v47 = vrot.slane %v455_v45, 4 }
 0x185   :  { %v174_v48 = vmax.f32 %v172_v44, %v173_v46  ;;  %v457_v49 = vmax.f32 %v455_v45, %v456_v47 }
 0x187   :  { %v177_v50 = vsub.f32 %v153_v27, %v174_v48  ;;  %v458_v51 = vrot.slane %v457_v49, 2  ;;  %v175_v52 = vsub.f32 %v143_v22, %v174_v48  ;;  %v176_v53 = vsub.f32 %v677_v20, %v174_v48 }
 0x188   :  { %v178_v54 = vsub.f32 %v680_v25, %v174_v48 }
 0x189   :  { %v183_v55 = vmul.f32 1.442695, %v177_v50  ;;  %v459_v56 = vmax.f32 %v457_v49, %v458_v51  ;;  %v179_v57 = vmul.f32 1.442695, %v175_v52  ;;  %v181_v58 = vmul.f32 1.442695, %v176_v53 }
 0x18a   :  { %v185_v59 = vmul.f32 1.442695, %v178_v54  ;;  %v302_v54 = vstv %s969_s1  ;;  %s831_s1 = smov [#allocation6]  }
 0x18b   :  { %760 = vpow2.f32 %v183_v55  ;;  %v460_v60 = vrot.slane %v459_v56, 1  ;;  %s607_s24 = sshll.u32 %s831_s1, 4  ;;  %s608_s24 = int_to_ptr.vmem [resolvable:$true] %s607_s24 }
 0x18c   :  { %762 = vpow2.f32 %v179_v57  ;;  %s802_s25 = scalar_lea.vmem %s608_s24, 1024  ;;  %p807_p9 = scmp.lt.s32.totalorder %s608_s24, %s608_s24 }
 0x18d   :  { %v461_v61 = vmax.f32 %v459_v56, %v460_v60  ;;  %764 = vpow2.f32 %v181_v58  ;;  %p803_p8 = scmp.ne.s32.totalorder %s608_s24, %s802_s25  ;;  %p808_p10 = scmp.lt.s32.totalorder %s802_s25, %s802_s25 }
 0x18e   :  { %766 = vpow2.f32 %v185_v59 }
 0x18f   :  { %v462_v62 = vsub.f32 %v430_v33, %v461_v61  ;;  %v463_v63 = vsub.f32 %v705_v30, %v461_v61  ;;  %v464_v5 = vsub.f32 %v440_v40, %v461_v61  ;;  %v465_v7 = vsub.f32 %v708_v37, %v461_v61  ;;  %p809_p11 = por %p808_p10, %p807_p9 }
 0x191   :  { %v466_v9 = vmul.f32 1.442695, %v462_v62  ;;  %v468_v11 = vmul.f32 1.442695, %v463_v63  ;;  %v470_v12 = vmul.f32 1.442695, %v464_v5  ;;  %p810_p12 = pnand %p809_p11, %p803_p8 }
 0x192   :  { %v472_v13 = vmul.f32 1.442695, %v465_v7 }
 0x193   :  { %768 = vpow2.f32 %v466_v9 }
 0x194   :  { %770 = vpow2.f32 %v468_v11 }
 0x195   :  { %v761_v14 = vpop.eup %760  ;;  %772 = vpow2.f32 %v470_v12 }
 0x196   :  { %v763_v15 = vpop.eup %762  ;;  %774 = vpow2.f32 %v472_v13  ;;  %v190_v23 = vsel %vm64_vm0, %v761_v14, 0.0 }
 0x197   :  { %v765_v16 = vpop.eup %764  ;;  %v187_v17 = vsel %vm64_vm0, %v763_v15, 0.0 }
 0x198   :  { %v767_v18 = vpop.eup %766  ;;  %v188_v19 = vsel %vm64_vm0, %v765_v16, 0.0  ;;  %v731_v20 = vpack.c.bf16 %v765_v16, %v763_v15 }
 0x199   :  { %v189_v21 = vadd.f32 %v188_v19, %v187_v17  ;;  %v735_v22 = vpack.c.bf16 %v767_v18, %v761_v14  ;;  %v192_v25 = vsel %vm64_vm0, %v767_v18, 0.0 }
 0x19a   :  { %732 = vmatprep.subr.bf16.mxu1 %v731_v20 }
 0x19b   :  { %v191_v24 = vadd.f32 %v190_v23, %v189_v21  ;;  %734 = vmatpush3.bf16.msra.mxu1 %v731_v20 }
 0x19c   :  { %736 = vmatprep.subr.bf16.mxu1 %v735_v22 }
 0x19d   :  { %v769_v26 = vpop.eup %768  ;;  %v193_v27 = vadd.f32 %v192_v25, %v191_v24 }
 0x19e   :  { %v771_v28 = vpop.eup %770  ;;  %v474_v29 = vsel %vm64_vm0, %v769_v26, 0.0 }
 0x19f   :  { %v773_v30 = vpop.eup %772  ;;  %v475_v31 = vsel %vm64_vm0, %v771_v28, 0.0  ;;  %738 = vmatpush3.bf16.msra.mxu1 %v735_v22  ;;  %v747_v32 = vpack.c.bf16 %v771_v28, %v769_v26  ;;  %v194_v40 = vrot.slane %v193_v27, 4 }
 0x1a0   :  { %v775_v33 = vpop.eup %774  ;;  %v476_v34 = vadd.f32 %v475_v31, %v474_v29  ;;  %v477_v35 = vsel %vm64_vm0, %v773_v30, 0.0 }
 0x1a1   :  { %748 = vmatprep.subr.bf16.mxu1 %v747_v32  ;;  %v751_v36 = vpack.c.bf16 %v775_v33, %v773_v30  ;;  %v479_v38 = vsel %vm64_vm0, %v775_v33, 0.0  ;;  %v195_v41 = vadd.f32 %v194_v40, %v193_v27 }
 0x1a2   :  { %v478_v37 = vadd.f32 %v477_v35, %v476_v34  ;;  %690 = vmatmul.mubr.msk.f32.vlgmr.msra.gmra.mrb[0].mxu1 %vm64_vm0, %v864_v1 }
 0x1a3   :  { %750 = vmatpush3.bf16.msra.mxu1 %v747_v32  ;;  %692 = vmatprep.mubr.msk.f32.mxu1 %vm64_vm0, %v870_v3  ;;  %v196_v42 = vrot.slane %v195_v41, 2 }
 0x1a4   :  { %v480_v39 = vadd.f32 %v479_v38, %v478_v37  ;;  %752 = vmatprep.subr.bf16.mxu1 %v751_v36 }
 0x1a5   :  { %v197_v44 = vadd.f32 %v196_v42, %v195_v41 }
 0x1a6   :  { %693 = vmatmul.mubr.msk.f32.gmra.mrb[2].mxu1 %vm64_vm0, %v872_v4  ;;  %v481_v43 = vrot.slane %v480_v39, 4 }
 0x1a7   :  { %754 = vmatpush3.bf16.msra.mxu1 %v751_v36  ;;  %717 = vmatprep.mubr.msk.f32.mxu1 %vm64_vm0, %v866_v2  ;;  %v198_v46 = vrot.slane %v197_v44, 1 }
 0x1a8   :  { %v482_v45 = vadd.f32 %v481_v43, %v480_v39 }
 0x1a9   :  { %v199_v48 = vadd.f32 %v198_v46, %v197_v44 }
 0x1aa   :  { %718 = vmatmul.mubr.msk.f32.vlgmr.msra.gmra.mrb[4].mxu1 %vm64_vm0, %v876_v6  ;;  %v483_v47 = vrot.slane %v482_v45, 2 }
 0x1ab   :  { %720 = vmatprep.mubr.msk.f32.mxu1 %vm64_vm0, %v884_v8  ;;  %776 = vrcp.f32 %v199_v48 }
 0x1ac   :  { %v484_v49 = vadd.f32 %v483_v47, %v482_v45 }
 0x1ae   :  { %721 = vmatmul.mubr.msk.f32.gmra.mrb[6].mxu1 %vm64_vm0, %v890_v10  ;;  %v485_v50 = vrot.slane %v484_v49, 1 }
 0x1b0   :  { %v486_v51 = vadd.f32 %v485_v50, %v484_v49 }
 0x1b2   :  { %778 = vrcp.f32 %v486_v51 }
 0x1b5   :  { %v777_v52 = vpop.eup %776 }
 0x1bc   :  { %v779_v11 = vpop.eup %778 }
 0x275   :  { %v691_v53 = vpop.f32.mrb[0].mxu1 }
 0x276   :  { %v299_v55 = vmul.f32 %v777_v52, %v691_v53  ;;  %v278_v56 = vpop.f32.mrb[1].mxu1 }
 0x277   :  { %v298_v57 = vmul.f32 %v777_v52, %v278_v56 }
 0x278   :  { %v304_v58 = vmul.f32 %v302_v54, %v299_v55 }
 0x279   :  { %v303_v59 = vmul.f32 %v302_v54, %v298_v57  ;;  %v694_v60 = vpop.f32.mrb[2].mxu1 }
 0x27a   :  { %v308_v61 = vadd.f32 %v304_v58, %v864_v1  ;;  %v301_v62 = vmul.f32 %v777_v52, %v694_v60  ;;  %v288_v63 = vpop.f32.mrb[3].mxu1 }
 0x27b   :  { %v307_v5 = vadd.f32 %v303_v59, %v862_v0  ;;  %v300_v7 = vmul.f32 %v777_v52, %v288_v63 }
 0x27c   :  { %312 = vst.msk [vmem:[#allocation6 + $0x8] sm:$0xff] %vm64_vm0, %v308_v61  ;;  %v306_v9 = vmul.f32 %v302_v54, %v301_v62 }
 0x27d   :  { %311 = vst.msk [vmem:[#allocation6] sm:$0xff] %vm64_vm0, %v307_v5  ;;  %v305_v12 = vmul.f32 %v302_v54, %v300_v7  ;;  %v719_v13 = vpop.f32.mrb[4].mxu1 }
 0x27e   :  { %v310_v14 = vadd.f32 %v306_v9, %v872_v4  ;;  %v586_v15 = vmul.f32 %v779_v11, %v719_v13  ;;  %v565_v16 = vpop.f32.mrb[5].mxu1 }
 0x27f   :  { %v309_v17 = vadd.f32 %v305_v12, %v870_v3  ;;  %v585_v1 = vmul.f32 %v779_v11, %v565_v16 }
 0x280   :  { %314 = vst.msk [vmem:[#allocation6 + $0x18] sm:$0xff] %vm64_vm0, %v310_v14  ;;  %v590_v18 = vmul.f32 %v586_v15, %v302_v54 }
 0x281   :  { %313 = vst.msk [vmem:[#allocation6 + $0x10] sm:$0xff] %vm64_vm0, %v309_v17  ;;  %v589_v0 = vmul.f32 %v585_v1, %v302_v54  ;;  %v722_v19 = vpop.f32.mrb[6].mxu1 }
 0x282   :  { %v594_v20 = vadd.f32 %v590_v18, %v876_v6  ;;  %v588_v21 = vmul.f32 %v779_v11, %v722_v19  ;;  %v575_v22 = vpop.f32.mrb[7].mxu1 }
 0x283   :  { %v593_v23 = vadd.f32 %v589_v0, %v866_v2  ;;  %v587_v24 = vmul.f32 %v779_v11, %v575_v22 }
 0x284   :  { %599 = vst.msk [vmem:[#allocation6 + $0x28] sm:$0xff] %vm64_vm0, %v594_v20  ;;  %v592_v4 = vmul.f32 %v588_v21, %v302_v54 }
 0x285   :  { %598 = vst.msk [vmem:[#allocation6 + $0x20] sm:$0xff] %vm64_vm0, %v593_v23  ;;  %v591_v3 = vmul.f32 %v587_v24, %v302_v54 }
 0x286   :  { %v596_v25 = vadd.f32 %v592_v4, %v890_v10 }
 0x287   :  { %v595_v26 = vadd.f32 %v591_v3, %v884_v8 }
 0x288   :  { %601 = vst.msk [vmem:[#allocation6 + $0x38] sm:$0xff] %vm64_vm0, %v596_v25 }
 0x289   :  { %600 = vst.msk [vmem:[#allocation6 + $0x30] sm:$0xff] %vm64_vm0, %v595_v26 }
 0x28a   :  { %813 = shalt.err (!%p810_p12)
}
 0x28b   :  { %s814_s28 = scalar_lea.hbm %s970_s2, 1024 }
 0x28c   :  { %p815_p13 = scmp.ne.s32.totalorder %s970_s2, %s814_s28  ;;  %p818_p0 = scmp.lt.u32.totalorder %s814_s28, %s970_s2 }
 0x28e   :  { %p820_p1 = pnand %p818_p0, %p815_p13 }
 0x290   :  { %823 = shalt.err (!%p820_p1)
}
 0x291   :  { %613 = dma.vmem_to_hbm [thread:$0]  %s608_s24, 1024, %s970_s2, [#allocation5], %s829_s19, %s829_s19, %s830_s20  }
 0x292   :  { %826 = dma.done.wait [#allocation5], 1024  }
 0x293   :  { %827 = vsyncadd [#allocation5], 4294966272 }
 0x294   :  { %617 = vsyncpa [#allocation4], 1 }
 0x295   :  { %618 = vsyncpa [#allocation5], 1 }

</bundles_post_ra>
